<compile_context>
chip_gen: v6e
topology: v6e:2x2x1
jax: 0.10.0
libtpu: 0.0.40
codegen_flags: <defaults>
</compile_context>

<pallas_src>
import functools

import jax
import jax.numpy as jnp
import numpy as np
from jax import lax
from jax.experimental import pallas as pl
from jax.experimental.pallas import tpu as pltpu

C_IN, C_OUT, K = 3, 1, 3
LANE = 128
SUBLANE = 8


def _round_up(a, m):
    return ((a + m - 1) // m) * m


def _conv_kernel(w_ref, b_ref, x_ref, o_ref, *, l_out, l_mid, img_w):
    """w_ref: SMEM (27,) flattened [c_in, kh, kw]; b_ref: SMEM (1,);
    x_ref: VMEM (C_IN, b_blk, l_in) lane-flattened planes, batch on sublanes;
    o_ref: VMEM (b_blk, l_out) lane-dense output slab."""
    # Pre-read all scalars from SMEM (keeps scalar loads off the vector path).
    wv = [w_ref[i] for i in range(C_IN * K * K)]
    bias = b_ref[0]
    b_blk = o_ref.shape[0]
    n_sub = b_blk // SUBLANE

    def body(j, carry):
        row0 = pl.multiple_of(j * SUBLANE, SUBLANE)
        # One dense (8, l_in) load per channel; the 6 non-trivial kw-shifted copies are
        # built once here and reused by all three kh rows (8 lane shifts total vs 24).
        shifted = []
        for c in range(C_IN):
            plane = x_ref[c, pl.ds(row0, SUBLANE), :]          # (8, l_in), dense vregs
            shifted.append([plane[:, kw:kw + l_mid] for kw in range(K)])

        # Three independent per-kh partial accumulators (restores VALU ILP),
        # each a tree-sum of its 9 MAC terms; bias folded into the kh=0 partial.
        partials = []
        for kh in range(K):
            terms = [shifted[c][kw] * wv[c * (K * K) + kh * K + kw]
                     for c in range(C_IN) for kw in range(K)]
            if kh == 0:
                terms[0] = terms[0] + bias
            while len(terms) > 1:
                nxt = [terms[t] + terms[t + 1] for t in range(0, len(terms) - 1, 2)]
                if len(terms) % 2:
                    nxt.append(terms[-1])
                terms = nxt
            partials.append(terms[0])

        # Combine per-kh partials with the remaining 2 lane shifts of kh*W.
        out = partials[0][:, :l_out]
        for kh in range(1, K):
            out = out + partials[kh][:, kh * img_w: kh * img_w + l_out]
        o_ref[pl.ds(row0, SUBLANE), :] = out                   # unmasked, lane-dense store
        return carry

    lax.fori_loop(0, n_sub, body, 0, unroll=(n_sub <= 4))


def conv2d_pallas(x, w, b):
    """x: (N, 3, H, W) f32, w: (1, 3, 3, 3) f32 (OIHW), b: (1,) f32 -> (N, 1, OH, OW) f32."""
    n, c, h, wd = x.shape
    assert c == C_IN
    oh, ow = h - K + 1, wd - K + 1
    hw = h * wd

    l_out = _round_up(hw, LANE)                 # lane-dense store width
    l_mid = l_out + (K - 1) * wd                # per-kh partial width (covers kh combine)
    s_max = (K - 1) * wd + (K - 1)              # largest flat window shift
    l_in = _round_up(l_out + s_max, LANE)       # padded flat input width (covers all slices)

    # Tile sizing: target ~4 MiB of (input+output) per step; double-buffered this stays
    # well under the 32 MiB scoped VMEM on every generation (v7x: 64 MiB physical).
    per_img_bytes = (C_IN * l_in + l_out) * 4
    budget = 4 * 1024 * 1024
    b_blk = (budget // per_img_bytes) // SUBLANE * SUBLANE
    b_blk = max(SUBLANE, min(b_blk, _round_up(n, SUBLANE)))
    grid_n = -(-_round_up(n, SUBLANE) // b_blk)
    n_pad = grid_n * b_blk
    # TODO(synk): for very large H*W, tile H with a K-1 row halo instead of whole planes.

    # Lane-dense relayout: batch -> sublanes, flattened plane -> lanes, zero pad.
    # Single fused XLA transpose+pad pass (see v5e note at top).
    x_flat = jnp.pad(jnp.transpose(x.reshape(n, C_IN, hw), (1, 0, 2)),
                     ((0, 0), (0, n_pad - n), (0, l_in - hw)))

    kernel = functools.partial(_conv_kernel, l_out=l_out, l_mid=l_mid, img_w=wd)

    out_flat = pl.pallas_call(
        kernel,
        out_shape=jax.ShapeDtypeStruct((n_pad, l_out), jnp.float32),
        grid_spec=pltpu.PrefetchScalarGridSpec(
            num_scalar_prefetch=0,
            grid=(grid_n,),
            in_specs=[
                pl.BlockSpec(memory_space=pltpu.MemorySpace.SMEM),        # weights (27,)
                pl.BlockSpec(memory_space=pltpu.MemorySpace.SMEM),        # bias (1,)
                pl.BlockSpec((C_IN, b_blk, l_in), lambda i: (0, i, 0)),   # image planes
            ],
            out_specs=pl.BlockSpec((b_blk, l_out), lambda i: (i, 0)),
        ),
        compiler_params=pltpu.CompilerParams(
            dimension_semantics=("parallel",),        # disjoint tiles; shards on v7x 2-TC
            vmem_limit_bytes=32 * 1024 * 1024,
        ),
    )(w.reshape(-1), b, x_flat)

    # Un-flatten: flat index q = r*W + col; crop garbage tail rows/cols and batch padding.
    out_img = out_flat[:n, :hw].reshape(n, h, wd)[:, :oh, :ow]
    return out_img[:, None, :, :]


if __name__ == "__main__":
    key = jax.random.PRNGKey(0)
    kx, kw, kb = jax.random.split(key, 3)

    # Small shapes consistent with Conv2d(3, 1, 3): N=2, C=3, H=W=16.
    x = jax.random.normal(kx, (2, 3, 16, 16), dtype=jnp.float32)
    w = jax.random.normal(kw, (1, 3, 3, 3), dtype=jnp.float32) * 0.1
    b = jax.random.normal(kb, (1,), dtype=jnp.float32) * 0.1

    out = conv2d_pallas(x, w, b)
    jax.block_until_ready(out)

    # Cross-check against XLA's reference conv (NCHW / OIHW).
    ref = jax.lax.conv_general_dilated(
        x, w, window_strides=(1, 1), padding="VALID",
        dimension_numbers=("NCHW", "OIHW", "NCHW")) + b.reshape(1, 1, 1, 1)
    np.testing.assert_allclose(np.asarray(out), np.asarray(ref), rtol=1e-5, atol=1e-5)

    print("KERNEL_OK")
</pallas_src>

<mosaic_0001>
module attributes {stable_mosaic.version = 11 : i64} {
  func.func @_conv_kernel(%arg0: i32, %arg1: memref<27xf32, #tpu.memory_space<smem>>, %arg2: memref<1xf32, #tpu.memory_space<smem>>, %arg3: memref<3x8x384xf32, #tpu.memory_space<vmem>>, %arg4: memref<8x256xf32, #tpu.memory_space<vmem>>) attributes {dimension_semantics = [#tpu.dimension_semantics<parallel>], iteration_bounds = array<i64: 1>, scalar_prefetch = 0 : i64, scratch_operands = 0 : i64, tpu.core_type = #tpu.core_type<tc>, window_params = [{transform_indices = @transform_0, window_bounds = array<i64: 27>}, {transform_indices = @transform_1, window_bounds = array<i64: 1>}, {transform_indices = @transform_2, window_bounds = array<i64: 3, 8, 384>}, {transform_indices = @transform_3, window_bounds = array<i64: 8, 256>}]} {
    %c0 = arith.constant 0 : index
    %0 = memref.load %arg1[%c0] : memref<27xf32, #tpu.memory_space<smem>>
    %c1 = arith.constant 1 : index
    %1 = memref.load %arg1[%c1] : memref<27xf32, #tpu.memory_space<smem>>
    %c2 = arith.constant 2 : index
    %2 = memref.load %arg1[%c2] : memref<27xf32, #tpu.memory_space<smem>>
    %c3 = arith.constant 3 : index
    %3 = memref.load %arg1[%c3] : memref<27xf32, #tpu.memory_space<smem>>
    %c4 = arith.constant 4 : index
    %4 = memref.load %arg1[%c4] : memref<27xf32, #tpu.memory_space<smem>>
    %c5 = arith.constant 5 : index
    %5 = memref.load %arg1[%c5] : memref<27xf32, #tpu.memory_space<smem>>
    %c6 = arith.constant 6 : index
    %6 = memref.load %arg1[%c6] : memref<27xf32, #tpu.memory_space<smem>>
    %c7 = arith.constant 7 : index
    %7 = memref.load %arg1[%c7] : memref<27xf32, #tpu.memory_space<smem>>
    %c8 = arith.constant 8 : index
    %8 = memref.load %arg1[%c8] : memref<27xf32, #tpu.memory_space<smem>>
    %c9 = arith.constant 9 : index
    %9 = memref.load %arg1[%c9] : memref<27xf32, #tpu.memory_space<smem>>
    %c10 = arith.constant 10 : index
    %10 = memref.load %arg1[%c10] : memref<27xf32, #tpu.memory_space<smem>>
    %c11 = arith.constant 11 : index
    %11 = memref.load %arg1[%c11] : memref<27xf32, #tpu.memory_space<smem>>
    %c12 = arith.constant 12 : index
    %12 = memref.load %arg1[%c12] : memref<27xf32, #tpu.memory_space<smem>>
    %c13 = arith.constant 13 : index
    %13 = memref.load %arg1[%c13] : memref<27xf32, #tpu.memory_space<smem>>
    %c14 = arith.constant 14 : index
    %14 = memref.load %arg1[%c14] : memref<27xf32, #tpu.memory_space<smem>>
    %c15 = arith.constant 15 : index
    %15 = memref.load %arg1[%c15] : memref<27xf32, #tpu.memory_space<smem>>
    %c16 = arith.constant 16 : index
    %16 = memref.load %arg1[%c16] : memref<27xf32, #tpu.memory_space<smem>>
    %c17 = arith.constant 17 : index
    %17 = memref.load %arg1[%c17] : memref<27xf32, #tpu.memory_space<smem>>
    %c18 = arith.constant 18 : index
    %18 = memref.load %arg1[%c18] : memref<27xf32, #tpu.memory_space<smem>>
    %c19 = arith.constant 19 : index
    %19 = memref.load %arg1[%c19] : memref<27xf32, #tpu.memory_space<smem>>
    %c20 = arith.constant 20 : index
    %20 = memref.load %arg1[%c20] : memref<27xf32, #tpu.memory_space<smem>>
    %c21 = arith.constant 21 : index
    %21 = memref.load %arg1[%c21] : memref<27xf32, #tpu.memory_space<smem>>
    %c22 = arith.constant 22 : index
    %22 = memref.load %arg1[%c22] : memref<27xf32, #tpu.memory_space<smem>>
    %c23 = arith.constant 23 : index
    %23 = memref.load %arg1[%c23] : memref<27xf32, #tpu.memory_space<smem>>
    %c24 = arith.constant 24 : index
    %24 = memref.load %arg1[%c24] : memref<27xf32, #tpu.memory_space<smem>>
    %c25 = arith.constant 25 : index
    %25 = memref.load %arg1[%c25] : memref<27xf32, #tpu.memory_space<smem>>
    %c26 = arith.constant 26 : index
    %26 = memref.load %arg1[%c26] : memref<27xf32, #tpu.memory_space<smem>>
    %c0_0 = arith.constant 0 : index
    %27 = memref.load %arg2[%c0_0] : memref<1xf32, #tpu.memory_space<smem>>
    %c0_i32 = arith.constant 0 : i32
    %c8_i32 = arith.constant 8 : i32
    %28 = arith.muli %c0_i32, %c8_i32 : i32
    %29 = tpu.assume_multiple %28, 8 : i32
    %c0_1 = arith.constant 0 : index
    %30 = arith.index_cast %29 : i32 to index
    %c0_2 = arith.constant 0 : index
    %31 = vector.load %arg3[%c0_1, %30, %c0_2] : memref<3x8x384xf32, #tpu.memory_space<vmem>>, vector<1x8x384xf32>
    %32 = vector.shape_cast %31 : vector<1x8x384xf32> to vector<8x384xf32>
    %33 = vector.extract_strided_slice %32 {offsets = [0, 0], sizes = [8, 288], strides = [1, 1]} : vector<8x384xf32> to vector<8x288xf32>
    %34 = vector.extract_strided_slice %32 {offsets = [0, 1], sizes = [8, 288], strides = [1, 1]} : vector<8x384xf32> to vector<8x288xf32>
    %35 = vector.extract_strided_slice %32 {offsets = [0, 2], sizes = [8, 288], strides = [1, 1]} : vector<8x384xf32> to vector<8x288xf32>
    %c1_3 = arith.constant 1 : index
    %36 = arith.index_cast %29 : i32 to index
    %c0_4 = arith.constant 0 : index
    %37 = vector.load %arg3[%c1_3, %36, %c0_4] : memref<3x8x384xf32, #tpu.memory_space<vmem>>, vector<1x8x384xf32>
    %38 = vector.shape_cast %37 : vector<1x8x384xf32> to vector<8x384xf32>
    %39 = vector.extract_strided_slice %38 {offsets = [0, 0], sizes = [8, 288], strides = [1, 1]} : vector<8x384xf32> to vector<8x288xf32>
    %40 = vector.extract_strided_slice %38 {offsets = [0, 1], sizes = [8, 288], strides = [1, 1]} : vector<8x384xf32> to vector<8x288xf32>
    %41 = vector.extract_strided_slice %38 {offsets = [0, 2], sizes = [8, 288], strides = [1, 1]} : vector<8x384xf32> to vector<8x288xf32>
    %c2_5 = arith.constant 2 : index
    %42 = arith.index_cast %29 : i32 to index
    %c0_6 = arith.constant 0 : index
    %43 = vector.load %arg3[%c2_5, %42, %c0_6] : memref<3x8x384xf32, #tpu.memory_space<vmem>>, vector<1x8x384xf32>
    %44 = vector.shape_cast %43 : vector<1x8x384xf32> to vector<8x384xf32>
    %45 = vector.extract_strided_slice %44 {offsets = [0, 0], sizes = [8, 288], strides = [1, 1]} : vector<8x384xf32> to vector<8x288xf32>
    %46 = vector.extract_strided_slice %44 {offsets = [0, 1], sizes = [8, 288], strides = [1, 1]} : vector<8x384xf32> to vector<8x288xf32>
    %47 = vector.extract_strided_slice %44 {offsets = [0, 2], sizes = [8, 288], strides = [1, 1]} : vector<8x384xf32> to vector<8x288xf32>
    %48 = vector.broadcast %0 : f32 to vector<8x288xf32>
    %49 = arith.mulf %33, %48 : vector<8x288xf32>
    %50 = vector.broadcast %1 : f32 to vector<8x288xf32>
    %51 = arith.mulf %34, %50 : vector<8x288xf32>
    %52 = vector.broadcast %2 : f32 to vector<8x288xf32>
    %53 = arith.mulf %35, %52 : vector<8x288xf32>
    %54 = vector.broadcast %9 : f32 to vector<8x288xf32>
    %55 = arith.mulf %39, %54 : vector<8x288xf32>
    %56 = vector.broadcast %10 : f32 to vector<8x288xf32>
    %57 = arith.mulf %40, %56 : vector<8x288xf32>
    %58 = vector.broadcast %11 : f32 to vector<8x288xf32>
    %59 = arith.mulf %41, %58 : vector<8x288xf32>
    %60 = vector.broadcast %18 : f32 to vector<8x288xf32>
    %61 = arith.mulf %45, %60 : vector<8x288xf32>
    %62 = vector.broadcast %19 : f32 to vector<8x288xf32>
    %63 = arith.mulf %46, %62 : vector<8x288xf32>
    %64 = vector.broadcast %20 : f32 to vector<8x288xf32>
    %65 = arith.mulf %47, %64 : vector<8x288xf32>
    %66 = vector.broadcast %27 : f32 to vector<8x288xf32>
    %67 = arith.addf %49, %66 : vector<8x288xf32>
    %68 = arith.addf %67, %51 : vector<8x288xf32>
    %69 = arith.addf %53, %55 : vector<8x288xf32>
    %70 = arith.addf %57, %59 : vector<8x288xf32>
    %71 = arith.addf %61, %63 : vector<8x288xf32>
    %72 = arith.addf %68, %69 : vector<8x288xf32>
    %73 = arith.addf %70, %71 : vector<8x288xf32>
    %74 = arith.addf %72, %73 : vector<8x288xf32>
    %75 = arith.addf %74, %65 : vector<8x288xf32>
    %76 = vector.broadcast %3 : f32 to vector<8x288xf32>
    %77 = arith.mulf %33, %76 : vector<8x288xf32>
    %78 = vector.broadcast %4 : f32 to vector<8x288xf32>
    %79 = arith.mulf %34, %78 : vector<8x288xf32>
    %80 = vector.broadcast %5 : f32 to vector<8x288xf32>
    %81 = arith.mulf %35, %80 : vector<8x288xf32>
    %82 = vector.broadcast %12 : f32 to vector<8x288xf32>
    %83 = arith.mulf %39, %82 : vector<8x288xf32>
    %84 = vector.broadcast %13 : f32 to vector<8x288xf32>
    %85 = arith.mulf %40, %84 : vector<8x288xf32>
    %86 = vector.broadcast %14 : f32 to vector<8x288xf32>
    %87 = arith.mulf %41, %86 : vector<8x288xf32>
    %88 = vector.broadcast %21 : f32 to vector<8x288xf32>
    %89 = arith.mulf %45, %88 : vector<8x288xf32>
    %90 = vector.broadcast %22 : f32 to vector<8x288xf32>
    %91 = arith.mulf %46, %90 : vector<8x288xf32>
    %92 = vector.broadcast %23 : f32 to vector<8x288xf32>
    %93 = arith.mulf %47, %92 : vector<8x288xf32>
    %94 = arith.addf %77, %79 : vector<8x288xf32>
    %95 = arith.addf %81, %83 : vector<8x288xf32>
    %96 = arith.addf %85, %87 : vector<8x288xf32>
    %97 = arith.addf %89, %91 : vector<8x288xf32>
    %98 = arith.addf %94, %95 : vector<8x288xf32>
    %99 = arith.addf %96, %97 : vector<8x288xf32>
    %100 = arith.addf %98, %99 : vector<8x288xf32>
    %101 = arith.addf %100, %93 : vector<8x288xf32>
    %102 = vector.broadcast %6 : f32 to vector<8x288xf32>
    %103 = arith.mulf %33, %102 : vector<8x288xf32>
    %104 = vector.broadcast %7 : f32 to vector<8x288xf32>
    %105 = arith.mulf %34, %104 : vector<8x288xf32>
    %106 = vector.broadcast %8 : f32 to vector<8x288xf32>
    %107 = arith.mulf %35, %106 : vector<8x288xf32>
    %108 = vector.broadcast %15 : f32 to vector<8x288xf32>
    %109 = arith.mulf %39, %108 : vector<8x288xf32>
    %110 = vector.broadcast %16 : f32 to vector<8x288xf32>
    %111 = arith.mulf %40, %110 : vector<8x288xf32>
    %112 = vector.broadcast %17 : f32 to vector<8x288xf32>
    %113 = arith.mulf %41, %112 : vector<8x288xf32>
    %114 = vector.broadcast %24 : f32 to vector<8x288xf32>
    %115 = arith.mulf %45, %114 : vector<8x288xf32>
    %116 = vector.broadcast %25 : f32 to vector<8x288xf32>
    %117 = arith.mulf %46, %116 : vector<8x288xf32>
    %118 = vector.broadcast %26 : f32 to vector<8x288xf32>
    %119 = arith.mulf %47, %118 : vector<8x288xf32>
    %120 = arith.addf %103, %105 : vector<8x288xf32>
    %121 = arith.addf %107, %109 : vector<8x288xf32>
    %122 = arith.addf %111, %113 : vector<8x288xf32>
    %123 = arith.addf %115, %117 : vector<8x288xf32>
    %124 = arith.addf %120, %121 : vector<8x288xf32>
    %125 = arith.addf %122, %123 : vector<8x288xf32>
    %126 = arith.addf %124, %125 : vector<8x288xf32>
    %127 = arith.addf %126, %119 : vector<8x288xf32>
    %128 = vector.extract_strided_slice %75 {offsets = [0, 0], sizes = [8, 256], strides = [1, 1]} : vector<8x288xf32> to vector<8x256xf32>
    %129 = vector.extract_strided_slice %101 {offsets = [0, 16], sizes = [8, 256], strides = [1, 1]} : vector<8x288xf32> to vector<8x256xf32>
    %130 = arith.addf %128, %129 : vector<8x256xf32>
    %131 = vector.extract_strided_slice %127 {offsets = [0, 32], sizes = [8, 256], strides = [1, 1]} : vector<8x288xf32> to vector<8x256xf32>
    %132 = arith.addf %130, %131 : vector<8x256xf32>
    %133 = arith.index_cast %29 : i32 to index
    %c0_7 = arith.constant 0 : index
    %134 = vector.load %arg4[%133, %c0_7] : memref<8x256xf32, #tpu.memory_space<vmem>>, vector<8x256xf32>
    tpu.vector_store %arg4[%133, %c0_7], %132 {strides = array<i32>} : memref<8x256xf32, #tpu.memory_space<vmem>>, vector<8x256xf32>,
    %c1_i32 = arith.constant 1 : i32
    return
  }
  func.func @transform_0(%arg0: i32) -> i32 {
    %c0_i32 = arith.constant 0 : i32
    %c0_i32_0 = arith.constant 0 : i32
    return %c0_i32 : i32
  }
  func.func @transform_1(%arg0: i32) -> i32 {
    %c0_i32 = arith.constant 0 : i32
    %c0_i32_0 = arith.constant 0 : i32
    return %c0_i32 : i32
  }
  func.func @transform_2(%arg0: i32) -> (i32, i32, i32) {
    %c0_i32 = arith.constant 0 : i32
    %c0_i32_0 = arith.constant 0 : i32
    %c0_i32_1 = arith.constant 0 : i32
    return %c0_i32, %arg0, %c0_i32_0 : i32, i32, i32
  }
  func.func @transform_3(%arg0: i32) -> (i32, i32) {
    %c0_i32 = arith.constant 0 : i32
    %c0_i32_0 = arith.constant 0 : i32
    return %arg0, %c0_i32 : i32, i32
  }
}

</mosaic_0001>

<bundles_post_ra>
// kernel: tpu_custom_call.1
= control target key start
LH: loop header
LB: loop body
LE: loop exit
PB: predicated region body
PF: predicated region fallthrough
CT: control target
= control target key end

     0   :  { %9 = vsyncpa [#allocation6], 0  ;;  %s1082_s0 = inlined_call_operand.vmem [shape: f32[27], index: 0, kind: input, shape index: {}]   ;;  %s1083_s1 = inlined_call_operand.<no memory space> [shape: f32[1], index: 1, kind: input, shape index: {}]   ;;  %s1084_s2 = inlined_call_operand.hbm [shape: f32[3,8,384], index: 2, kind: input, shape index: {}]   ;;  %s1085_s3 = inlined_call_operand.hbm [shape: f32[8,256], index: 3, kind: output, shape index: {}]  }
   0x1   :  { %10 = vsyncpa [#allocation4], 0 }
   0x2   :  { %11 = vsyncpa [#allocation5], 0  ;;  %s18_s14 = sshll.u32 %s1082_s0, 4  ;;  %s19_s14 = int_to_ptr.vmem [resolvable:$true] %s18_s14 }
   0x3   :  { %s695_s15 = scalar_lea.vmem %s19_s14, 16  ;;  %p700_p1 = scmp.lt.s32.totalorder %s19_s14, %s19_s14 }
   0x4   :  { %p696_p0 = scmp.ne.s32.totalorder %s19_s14, %s695_s15  ;;  %p701_p2 = scmp.lt.s32.totalorder %s695_s15, %s695_s15 }
   0x6   :  { %p702_p3 = por %p701_p2, %p700_p1 }
   0x8   :  { %p703_p4 = pnand %p702_p3, %p696_p0 }
   0xa   :  { %706 = shalt.err (!%p703_p4)
}
   0xb   :  { %s753_s16 = smov [#allocation3]   ;;  %s754_s17 = smov [#allocation7]  }
   0xc   :  { %21 = dma.vmem_to_smem %s19_s14, 16, %s753_s16, [#allocation6]  }
   0xd   :  { %s29_s18 = sshll.u32 %s754_s17, 4  ;;  %s30_s18 = int_to_ptr.vmem [resolvable:$true] %s29_s18 }
   0xe   :  { %s715_s19 = scalar_lea.vmem %s30_s18, 1152  ;;  %p720_p6 = scmp.lt.s32.totalorder %s30_s18, %s30_s18 }
   0xf   :  { %p716_p5 = scmp.ne.s32.totalorder %s30_s18, %s715_s19  ;;  %p721_p7 = scmp.lt.s32.totalorder %s715_s19, %s715_s19 }
  0x11   :  { %p722_p8 = por %p721_p7, %p720_p6 }
  0x13   :  { %p723_p9 = pnand %p722_p8, %p716_p5 }
  0x15   :  { %726 = shalt.err (!%p723_p9)
}
  0x16   :  { %s755_s0 = smov 384   ;;  %s756_s20 = smov 24  }
  0x17   :  { %35 = dma.hbm_to_vmem [thread:$0]  %s1084_s2, 1152, %s30_s18, [#allocation4], %s755_s0, %s755_s0, %s756_s20  }
  0x18   :  { %747 = dma.done.wait [#allocation6], 16  }
  0x19   :  { %748 = vsyncadd [#allocation6], 4294967280 }
  0x1a   :  { %749 = dma.done.wait [#allocation4], 1152  }
  0x1b   :  { %750 = vsyncadd [#allocation4], 4294966144 }
  0x1c   :  { %42 = sfence }
  0x1d   :  { %s679_s23 = sld [smem:[#allocation3 + $0x16]]  ;;  %v790_v0 = vld [vmem:[#allocation7 + $0x40] sm:$0xff]  ;;  %v792_v1 = vld [vmem:[#allocation7 + $0x30] sm:$0xff]  ;;  %v794_v3 = vld [vmem:[#allocation7 + $0x38] sm:$0xff]  ;;  %s757_s2 = smov 127   ;;  %vm136_vm0 = vcmask 1039360  }
  0x1e   :  { %s682_s24 = sld [smem:[#allocation3 + $0x19]]  ;;  %v810_v15 = vld [vmem:[#allocation7 + $0x18] sm:$0xff]  ;;  %v816_v18 = vld [vmem:[#allocation7 + $0x20] sm:$0xff]  ;;  %v818_v19 = vld [vmem:[#allocation7 + $0x28] sm:$0xff]  ;;  %s758_s29 = smov 2   ;;  %vm152_vm1 = vcmask 15360  }
  0x1f   :  { %s676_s25 = sld [smem:[#allocation3 + $0x13]]  ;;  %s759_s7 = smov 1   ;;  %vm220_vm2 = vcmask 7168   ;;  %vm204_vm3 = vcmask 1031168   ;;  %vm612_vm4 = vcmask 916480   ;;  %vm628_vm5 = vcmask 785408  }
  0x20   :  { %s669_s26 = sld [smem:[#allocation3 + $0xc]]  ;;  %s760_s14 = smov 126  }
  0x21   :  { %s671_s27 = sld [smem:[#allocation3 + $0xe]] }
  0x22   :  { %s672_s28 = sld [smem:[#allocation3 + $0xf]] }
  0x23   :  { %v287_v2 = vstv %s679_s23  ;;  %s674_s30 = sld [smem:[#allocation3 + $0x11]] }
  0x24   :  { %v290_v4 = vmul.f32 %v287_v2, %v790_v0  ;;  %v288_v5 = vmul.f32 %v287_v2, %v792_v1  ;;  %v459_v6 = vstv %s682_s24  ;;  %v289_v8 = vmul.f32 %v287_v2, %v794_v3  ;;  %s666_s4 = sld [smem:[#allocation3 + $0x9]]  ;;  %s761_s24 = smov 112  }
  0x25   :  { %v460_v7 = vmul.f32 %v459_v6, %v792_v1  ;;  %v462_v9 = vmul.f32 %v459_v6, %v790_v0  ;;  %v461_v10 = vmul.f32 %v459_v6, %v794_v3  ;;  %v116_v11 = vstv %s676_s25  ;;  %s678_s5 = sld [smem:[#allocation3 + $0x15]]  ;;  %v870_v6 = vld [vmem:[#allocation7] sm:$0xff]  ;;  %s762_s25 = smov 96  }
  0x26   :  { %353 = vrot.lane.b32.xlu1 %v290_v4, %s757_s2  ;;  %349 = vrot.lane.b32.xlu0 %v288_v5, %s757_s2  ;;  %v117_v12 = vmul.f32 %v116_v11, %v792_v1  ;;  %v118_v13 = vmul.f32 %v116_v11, %v794_v3  ;;  %v271_v14 = vstv %s669_s26  ;;  %v119_v16 = vmul.f32 %v116_v11, %v790_v0  ;;  %s681_s6 = sld [smem:[#allocation3 + $0x18]] }
  0x27   :  { %v272_v17 = vmul.f32 %v271_v14, %v810_v15  ;;  %v273_v20 = vmul.f32 %v271_v14, %v816_v18  ;;  %v274_v21 = vmul.f32 %v271_v14, %v818_v19  ;;  %v279_v22 = vstv %s671_s27  ;;  %s668_s8 = sld [smem:[#allocation3 + $0xb]] }
  0x28   :  { %v280_v23 = vmul.f32 %v279_v22, %v810_v15  ;;  %v281_v24 = vmul.f32 %v279_v22, %v816_v18  ;;  %v443_v25 = vstv %s672_s28  ;;  %v282_v26 = vmul.f32 %v279_v22, %v818_v19  ;;  %s661_s9 = sld [smem:[#allocation3 + $0x4]] }
  0x29   :  { %v445_v27 = vmul.f32 %v443_v25, %v816_v18  ;;  %v451_v28 = vstv %s674_s30  ;;  %v444_v29 = vmul.f32 %v443_v25, %v810_v15  ;;  %v446_v31 = vmul.f32 %v443_v25, %v818_v19  ;;  %s662_s10 = sld [smem:[#allocation3 + $0x5]]  ;;  %v893_v25 = vld [vmem:[#allocation7 + $0x8] sm:$0xff] }
  0x2a   :  { %521 = vrot.lane.b32.xlu1 %v460_v7, %s757_s2  ;;  %351 = vrot.lane.b32.xlu0 %v289_v8, %s757_s2  ;;  %v452_v30 = vmul.f32 %v451_v28, %v810_v15  ;;  %v454_v32 = vmul.f32 %v451_v28, %v818_v19  ;;  %v100_v33 = vstv %s666_s4  ;;  %v453_v35 = vmul.f32 %v451_v28, %v816_v18  ;;  %s675_s11 = sld [smem:[#allocation3 + $0x12]] }
  0x2b   :  { %v101_v34 = vmul.f32 %v100_v33, %v810_v15  ;;  %v283_v36 = vstv %s678_s5  ;;  %v103_v56 = vmul.f32 %v100_v33, %v818_v19  ;;  %v102_v8 = vmul.f32 %v100_v33, %v816_v18  ;;  %s664_s12 = sld [smem:[#allocation3 + $0x7]] }
  0x2c   :  { %v286_v37 = vmul.f32 %v283_v36, %v790_v0  ;;  %v284_v41 = vmul.f32 %v283_v36, %v792_v1  ;;  %v455_v42 = vstv %s681_s6  ;;  %v285_v51 = vmul.f32 %v283_v36, %v794_v3  ;;  %s680_s13 = sld [smem:[#allocation3 + $0x17]] }
  0x2d   :  { %v458_v46 = vmul.f32 %v455_v42, %v790_v0  ;;  %v457_v48 = vmul.f32 %v455_v42, %v794_v3  ;;  %v456_v60 = vmul.f32 %v455_v42, %v792_v1  ;;  %v108_v61 = vstv %s668_s8  ;;  %s665_s15 = sld [smem:[#allocation3 + $0x8]] }
  0x2e   :  { %525 = vrot.lane.b32.xlu1 %v462_v9, %s757_s2  ;;  %523 = vrot.lane.b32.xlu0 %v461_v10, %s757_s2  ;;  %v110_v63 = vmul.f32 %v108_v61, %v816_v18  ;;  %v263_v7 = vstv %s661_s9  ;;  %v109_v14 = vmul.f32 %v108_v61, %v810_v15  ;;  %s683_s16 = sld [smem:[#allocation3 + $0x1a]] }
  0x2f   :  { %v264_v9 = vmul.f32 %v263_v7, %v870_v6  ;;  %s670_s17 = sld [smem:[#allocation3 + $0xd]] }
  0x30   :  { %s673_s18 = sld [smem:[#allocation3 + $0x10]] }
  0x31   :  { %v435_v28 = vstv %s664_s12  ;;  %s658_s19 = sld [smem:[#allocation3 + $0x1]] }
  0x32   :  { %181 = vrot.lane.b32.xlu0 %v117_v12, %s757_s2  ;;  %183 = vrot.lane.b32.xlu1 %v118_v13, %s757_s2  ;;  %v878_v12 = vld [vmem:[#allocation7 + $0x10] sm:$0xff]  ;;  %v880_v13 = vstv %s662_s10  ;;  %v291_v33 = vstv %s680_s13  ;;  %v436_v36 = vmul.f32 %v435_v28, %v870_v6  ;;  %s659_s0 = sld [smem:[#allocation3 + $0x2]] }
  0x33   :  { %s677_s20 = sld [smem:[#allocation3 + $0x14]] }
  0x34   :  { %s667_s21 = sld [smem:[#allocation3 + $0xa]] }
  0x35   :  { %s663_s22 = sld [smem:[#allocation3 + $0x6]] }
  0x36   :  { %185 = vrot.lane.b32.xlu0 %v119_v16, %s757_s2  ;;  %315 = vrot.lane.b32.xlu1 %v272_v17, %s758_s29  ;;  %v266_v16 = vmul.f32 %v263_v7, %v878_v12  ;;  %v268_v17 = vmul.f32 %v880_v13, %v870_v6  ;;  %s660_s23 = sld [smem:[#allocation3 + $0x3]] }
  0x3a   :  { %317 = vrot.lane.b32.xlu0 %v273_v20, %s758_s29  ;;  %319 = vrot.lane.b32.xlu1 %v274_v21, %s758_s29 }
  0x3e   :  { %332 = vrot.lane.b32.xlu0 %v280_v23, %s757_s2  ;;  %334 = vrot.lane.b32.xlu1 %v281_v24, %s757_s2  ;;  %v111_v23 = vmul.f32 %v108_v61, %v818_v19  ;;  %v112_v24 = vstv %s675_s11 }
  0x3f   :  { %v114_v42 = vmul.f32 %v112_v24, %v794_v3 }
  0x42   :  { %336 = vrot.lane.b32.xlu0 %v282_v26, %s757_s2  ;;  %489 = vrot.lane.b32.xlu1 %v445_v27, %s758_s29 }
  0x46   :  { %487 = vrot.lane.b32.xlu0 %v444_v29, %s758_s29  ;;  %504 = vrot.lane.b32.xlu1 %v452_v30, %s757_s2  ;;  %v115_v30 = vmul.f32 %v112_v24, %v790_v0 }
  0x4a   :  { %491 = vrot.lane.b32.xlu0 %v446_v31, %s758_s29  ;;  %508 = vrot.lane.b32.xlu1 %v454_v32, %s757_s2  ;;  %v265_v31 = vmul.f32 %v263_v7, %v893_v25  ;;  %v437_v32 = vmul.f32 %v435_v28, %v893_v25 }
  0x4e   :  { %146 = vrot.lane.b32.xlu1 %v101_v34, %s758_s29  ;;  %506 = vrot.lane.b32.xlu0 %v453_v35, %s757_s2  ;;  %v292_v35 = vmul.f32 %v291_v33, %v792_v1 }
  0x98   :  { %v354_v38 = vpop.permute.xlu1 %353  ;;  %v350_v39 = vpop.permute.xlu0 %349 }
  0x99   :  { %v362_v40 = vadd.f32 %v354_v38, %v286_v37  ;;  %v439_v37 = vstv %s665_s15 }
  0x9b   :  { %387 = vrot.lane.b32.xlu1 %v362_v40, %s759_s7  ;;  %v438_v40 = vmul.f32 %v435_v28, %v878_v12 }
  0x9c   :  { %v522_v43 = vpop.permute.xlu1 %521  ;;  %v352_v44 = vpop.permute.xlu0 %351 }
  0x9d   :  { %v355_v45 = vsel %vm136_vm0, %v350_v39, %v352_v44  ;;  %v356_v54 = vsel %vm136_vm0, %v352_v44, %v354_v38  ;;  %v294_v38 = vmul.f32 %v291_v33, %v790_v0  ;;  %v915_v39 = vstv %s683_s16 }
  0x9e   :  { %v360_v47 = vadd.f32 %v355_v45, %v284_v41  ;;  %v361_v59 = vadd.f32 %v356_v54, %v285_v51  ;;  %v440_v41 = vmul.f32 %v439_v37, %v870_v6  ;;  %v464_v44 = vmul.f32 %v915_v39, %v792_v1 }
  0x9f   :  { %v293_v51 = vmul.f32 %v291_v33, %v794_v3 }
  0xa0   :  { %v526_v49 = vpop.permute.xlu1 %525  ;;  %v524_v50 = vpop.permute.xlu0 %523  ;;  %383 = vrot.lane.b32.xlu1 %v360_v47, %s759_s7 }
  0xa1   :  { %v534_v52 = vadd.f32 %v526_v49, %v458_v46  ;;  %v528_v53 = vsel %vm136_vm0, %v524_v50, %v526_v49  ;;  %v527_v62 = vsel %vm136_vm0, %v522_v43, %v524_v50  ;;  %v113_v50 = vmul.f32 %v112_v24, %v792_v1 }
  0xa2   :  { %v533_v55 = vadd.f32 %v528_v53, %v457_v48  ;;  %v532_v5 = vadd.f32 %v527_v62, %v456_v60  ;;  %v270_v48 = vmul.f32 %v880_v13, %v878_v12  ;;  %v269_v60 = vmul.f32 %v880_v13, %v893_v25 }
  0xa3   :  { %559 = vrot.lane.b32.xlu0 %v534_v52, %s759_s7 }
  0xa4   :  { %557 = vrot.lane.b32.xlu1 %v533_v55, %s759_s7  ;;  %v859_v57 = vpop.permute.xlu0 %181  ;;  %v861_v58 = vpop.permute.xlu1 %183  ;;  %v441_v55 = vmul.f32 %v439_v37, %v893_v25 }
  0xa5   :  { %v187_v52 = vsel %vm136_vm0, %v859_v57, %v861_v58 }
  0xa7   :  { %385 = vrot.lane.b32.xlu0 %v361_v59, %s759_s7  ;;  %v192_v59 = vadd.f32 %v187_v52, %v113_v50 }
  0xa8   :  { %150 = vrot.lane.b32.xlu1 %v103_v56, %s758_s29  ;;  %v186_v2 = vpop.permute.xlu0 %185  ;;  %v868_v4 = vpop.permute.xlu1 %315 }
  0xa9   :  { %v326_v26 = vadd.f32 %v868_v4, %v268_v17  ;;  %v194_v34 = vadd.f32 %v186_v2, %v115_v30  ;;  %v188_v45 = vsel %vm136_vm0, %v861_v58, %v186_v2 }
  0xaa   :  { %v193_v47 = vadd.f32 %v188_v45, %v114_v42 }
  0xab   :  { %555 = vrot.lane.b32.xlu0 %v532_v5, %s759_s7 }
  0xac   :  { %166 = vrot.lane.b32.xlu1 %v110_v63, %s757_s2  ;;  %v876_v10 = vpop.permute.xlu0 %317  ;;  %v320_v11 = vpop.permute.xlu1 %319  ;;  %v442_v63 = vmul.f32 %v439_v37, %v878_v12 }
  0xad   :  { %v322_v49 = vsel %vm152_vm1, %v876_v10, %v320_v11  ;;  %v321_v61 = vsel %vm152_vm1, %v868_v4, %v876_v10 }
  0xae   :  { %v328_v53 = vadd.f32 %v322_v49, %v270_v48  ;;  %v327_v58 = vadd.f32 %v321_v61, %v269_v60  ;;  %v466_v48 = vmul.f32 %v915_v39, %v790_v0  ;;  %v465_v61 = vmul.f32 %v915_v39, %v794_v3 }
  0xaf   :  { %148 = vrot.lane.b32.xlu0 %v102_v8, %s758_s29 }
  0xb0   :  { %298 = vrot.lane.b32.xlu1 %v264_v9, %s757_s2  ;;  %v333_v20 = vpop.permute.xlu0 %332  ;;  %v335_v21 = vpop.permute.xlu1 %334  ;;  %v275_v9 = vstv %s670_s17 }
  0xb1   :  { %v889_v22 = vsel %vm136_vm0, %v333_v20, %v335_v21  ;;  %v276_v10 = vmul.f32 %v275_v9, %v810_v15  ;;  %v278_v20 = vmul.f32 %v275_v9, %v818_v19 }
  0xb3   :  { %164 = vrot.lane.b32.xlu0 %v109_v14, %s757_s2  ;;  %v343_v13 = vadd.f32 %v889_v22, %v276_v10 }
  0xb4   :  { %302 = vrot.lane.b32.xlu1 %v266_v16, %s757_s2  ;;  %v897_v27 = vpop.permute.xlu0 %336  ;;  %v490_v54 = vpop.permute.xlu1 %489 }
  0xb5   :  { %v901_v29 = vsel %vm136_vm0, %v335_v21, %v897_v27  ;;  %v447_v21 = vstv %s673_s18  ;;  %v345_v28 = vadd.f32 %v897_v27, %v278_v20 }
  0xb6   :  { %v449_v30 = vmul.f32 %v447_v21, %v816_v18 }
  0xb7   :  { %168 = vrot.lane.b32.xlu0 %v111_v23, %s757_s2 }
  0xb8   :  { %366 = vrot.lane.b32.xlu1 %v326_v26, %s760_s14  ;;  %v488_v43 = vpop.permute.xlu0 %487  ;;  %v505_v7 = vpop.permute.xlu1 %504  ;;  %v448_v26 = vmul.f32 %v447_v21, %v810_v15 }
  0xb9   :  { %v498_v46 = vadd.f32 %v488_v43, %v440_v41  ;;  %v493_v56 = vsel %vm152_vm1, %v488_v43, %v490_v54 }
  0xba   :  { %v499_v62 = vadd.f32 %v493_v56, %v441_v55 }
  0xbb   :  { %300 = vrot.lane.b32.xlu0 %v265_v31, %s757_s2 }
  0xbc   :  { %472 = vrot.lane.b32.xlu1 %v437_v32, %s757_s2  ;;  %v492_v57 = vpop.permute.xlu0 %491  ;;  %v509_v4 = vpop.permute.xlu1 %508 }
  0xbd   :  { %v494_v2 = vsel %vm152_vm1, %v490_v54, %v492_v57  ;;  %v96_v54 = vstv %s659_s0 }
  0xbe   :  { %v500_v5 = vadd.f32 %v494_v2, %v442_v63  ;;  %v97_v60 = vmul.f32 %v96_v54, %v870_v6 }
  0xbf   :  { %218 = vrot.lane.b32.xlu0 %v194_v34, %s759_s7 }
  0xc0   :  { %417 = vrot.lane.b32.xlu1 %v292_v35, %s760_s14  ;;  %v954_v8 = vpop.permute.xlu1 %146  ;;  %v507_v14 = vpop.permute.xlu0 %506 }
  0xc1   :  { %v510_v31 = vsel %vm136_vm0, %v505_v7, %v507_v14  ;;  %v511_v32 = vsel %vm136_vm0, %v507_v14, %v509_v4  ;;  %v158_v2 = vadd.f32 %v954_v8, %v97_v60 }
  0xc2   :  { %v515_v37 = vadd.f32 %v510_v31, %v448_v26 }
  0xc3   :  { %470 = vrot.lane.b32.xlu0 %v436_v36, %s757_s2  ;;  %v277_v36 = vmul.f32 %v275_v9, %v816_v18 }
  0xc4   :  { %421 = vrot.lane.b32.xlu1 %v294_v38, %s760_s14  ;;  %v516_v38 = vadd.f32 %v511_v32, %v449_v30  ;;  %v431_v32 = vstv %s663_s22 }
  0xc5   :  { %v344_v45 = vadd.f32 %v901_v29, %v277_v36 }
  0xc7   :  { %474 = vrot.lane.b32.xlu0 %v438_v40, %s757_s2 }
  0xc8   :  { %589 = vrot.lane.b32.xlu1 %v464_v44, %s760_s14 }
  0xcb   :  { %538 = vrot.lane.b32.xlu0 %v498_v46, %s760_s14  ;;  %v450_v46 = vmul.f32 %v447_v21, %v818_v19 }
  0xcc   :  { %216 = vrot.lane.b32.xlu1 %v193_v47, %s759_s7 }
  0xcf   :  { %419 = vrot.lane.b32.xlu0 %v293_v51, %s760_s14  ;;  %v92_v51 = vstv %s658_s19 }
  0xd0   :  { %370 = vrot.lane.b32.xlu1 %v328_v53, %s760_s14  ;;  %v517_v53 = vadd.f32 %v509_v4, %v450_v46  ;;  %v94_v55 = vmul.f32 %v92_v51, %v893_v25 }
  0xd3   :  { %214 = vrot.lane.b32.xlu0 %v192_v59, %s759_s7 }
  0xd4   :  { %540 = vrot.lane.b32.xlu1 %v499_v62, %s760_s14  ;;  %v99_v62 = vmul.f32 %v96_v54, %v878_v12 }
  0xd7   :  { %368 = vrot.lane.b32.xlu0 %v327_v58, %s760_s14 }
  0xdb   :  { %542 = vrot.lane.b32.xlu0 %v500_v5, %s760_s14  ;;  %v93_v5 = vmul.f32 %v92_v51, %v870_v6 }
 0x10d   :  { %v388_v11 = vpop.permute.xlu1 %387 }
 0x112   :  { %v384_v16 = vpop.permute.xlu1 %383 }
 0x113   :  { %v394_v17 = vadd.f32 %v384_v16, %v343_v13  ;;  %v95_v13 = vmul.f32 %v92_v51, %v878_v12 }
 0x115   :  { %v560_v23 = vpop.permute.xlu0 %559  ;;  %400 = vrot.lane.b32.xlu1 %v394_v17, %s757_s2  ;;  %v98_v17 = vmul.f32 %v96_v54, %v893_v25 }
 0x116   :  { %v558_v24 = vpop.permute.xlu1 %557 }
 0x117   :  { %v562_v52 = vsel %vm220_vm2, %v558_v24, %v560_v23 }
 0x118   :  { %v568_v56 = vadd.f32 %v562_v52, %v517_v53 }
 0x119   :  { %v386_v22 = vpop.permute.xlu0 %385 }
 0x11a   :  { %v390_v33 = vsel %vm220_vm2, %v386_v22, %v388_v11  ;;  %v151_v34 = vpop.permute.xlu1 %150  ;;  %v389_v43 = vsel %vm220_vm2, %v384_v16, %v386_v22  ;;  %v120_v11 = vstv %s677_s20  ;;  %v104_v22 = vstv %s667_s21 }
 0x11b   :  { %v396_v35 = vadd.f32 %v390_v33, %v345_v28  ;;  %v395_v49 = vadd.f32 %v389_v43, %v344_v45  ;;  %v121_v16 = vmul.f32 %v120_v11, %v792_v1  ;;  %v105_v33 = vmul.f32 %v104_v22, %v810_v15 }
 0x11c   :  { %v106_v36 = vmul.f32 %v104_v22, %v816_v18  ;;  %v107_v46 = vmul.f32 %v104_v22, %v818_v19  ;;  %v122_v54 = vmul.f32 %v120_v11, %v794_v3 }
 0x11d   :  { %v556_v40 = vpop.permute.xlu0 %555  ;;  %404 = vrot.lane.b32.xlu1 %v396_v35, %s757_s2 }
 0x11e   :  { %v561_v27 = vsel %vm220_vm2, %v556_v40, %v558_v24  ;;  %v566_v41 = vadd.f32 %v556_v40, %v515_v37  ;;  %v969_v42 = vpop.permute.xlu1 %166  ;;  %v123_v24 = vmul.f32 %v120_v11, %v790_v0  ;;  %v432_v40 = vmul.f32 %v431_v32, %v870_v6 }
 0x11f   :  { %v567_v44 = vadd.f32 %v561_v27, %v516_v38  ;;  %v259_v38 = vstv %s660_s23 }
 0x120   :  { %572 = vrot.lane.b32.xlu0 %v566_v41, %s757_s2  ;;  %v260_v45 = vmul.f32 %v259_v38, %v870_v6 }
 0x121   :  { %v149_v47 = vpop.permute.xlu0 %148  ;;  %574 = vrot.lane.b32.xlu1 %v567_v44, %s757_s2 }
 0x122   :  { %v299_v50 = vpop.permute.xlu1 %298  ;;  %v154_v58 = vsel %vm152_vm1, %v149_v47, %v151_v34  ;;  %v153_v21 = vsel %vm152_vm1, %v954_v8, %v149_v47 }
 0x123   :  { %v160_v7 = vadd.f32 %v154_v58, %v99_v62  ;;  %v159_v26 = vadd.f32 %v153_v21, %v98_v17  ;;  %v262_v62 = vmul.f32 %v259_v38, %v878_v12  ;;  %v261_v58 = vmul.f32 %v259_v38, %v893_v25 }
 0x124   :  { %402 = vrot.lane.b32.xlu0 %v395_v49, %s757_s2 }
 0x125   :  { %v165_v29 = vpop.permute.xlu0 %164  ;;  %593 = vrot.lane.b32.xlu1 %v466_v48, %s760_s14 }
 0x126   :  { %v982_v59 = vpop.permute.xlu1 %302  ;;  %v170_v35 = vsel %vm136_vm0, %v165_v29, %v969_v42 }
 0x127   :  { %v175_v41 = vadd.f32 %v170_v35, %v105_v33 }
 0x128   :  { %576 = vrot.lane.b32.xlu0 %v568_v56, %s757_s2 }
 0x129   :  { %v989_v57 = vpop.permute.xlu0 %168  ;;  %132 = vrot.lane.b32.xlu1 %v94_v55, %s757_s2 }
 0x12a   :  { %v993_v63 = vpop.permute.xlu1 %366  ;;  %v171_v37 = vsel %vm136_vm0, %v969_v42, %v989_v57  ;;  %v177_v53 = vadd.f32 %v989_v57, %v107_v46  ;;  %v311_v57 = vadd.f32 %v982_v59, %v262_v62 }
 0x12b   :  { %v176_v15 = vadd.f32 %v171_v37, %v106_v36 }
 0x12c   :  { %591 = vrot.lane.b32.xlu0 %v465_v61, %s760_s14 }
 0x12d   :  { %v301_v4 = vpop.permute.xlu0 %300  ;;  %198 = vrot.lane.b32.xlu1 %v158_v2, %s760_s14 }
 0x12e   :  { %v304_v39 = vsel %vm136_vm0, %v299_v50, %v301_v4  ;;  %v1002_v9 = vsel %vm136_vm0, %v301_v4, %v982_v59  ;;  %v473_v10 = vpop.permute.xlu1 %472  ;;  %v434_v59 = vmul.f32 %v431_v32, %v878_v12 }
 0x12f   :  { %v309_v50 = vadd.f32 %v304_v39, %v260_v45  ;;  %v310_v39 = vadd.f32 %v1002_v9, %v261_v58 }
 0x130   :  { %130 = vrot.lane.b32.xlu0 %v93_v5, %s757_s2 }
 0x131   :  { %v219_v14 = vpop.permute.xlu0 %218  ;;  %202 = vrot.lane.b32.xlu1 %v160_v7, %s760_s14 }
 0x132   :  { %v418_v20 = vpop.permute.xlu1 %417 }
 0x134   :  { %134 = vrot.lane.b32.xlu0 %v95_v13, %s757_s2  ;;  %v433_v13 = vmul.f32 %v431_v32, %v893_v25 }
 0x135   :  { %v471_v23 = vpop.permute.xlu0 %470  ;;  %247 = vrot.lane.b32.xlu1 %v121_v16, %s760_s14 }
 0x136   :  { %v476_v28 = vsel %vm136_vm0, %v471_v23, %v473_v10  ;;  %v1015_v30 = vpop.permute.xlu1 %421 }
 0x137   :  { %v481_v47 = vadd.f32 %v476_v28, %v432_v40 }
 0x138   :  { %200 = vrot.lane.b32.xlu0 %v159_v26, %s760_s14 }
 0x139   :  { %v1018_v1 = vpop.permute.xlu0 %474  ;;  %251 = vrot.lane.b32.xlu1 %v123_v24, %s760_s14 }
 0x13a   :  { %v477_v8 = vsel %vm136_vm0, %v473_v10, %v1018_v1  ;;  %v1023_v31 = vpop.permute.xlu1 %589  ;;  %v483_v22 = vadd.f32 %v1018_v1, %v434_v59 }
 0x13b   :  { %v482_v21 = vadd.f32 %v477_v8, %v433_v13 }
 0x13d   :  { %v539_v0 = vpop.permute.xlu0 %538 }
 0x13e   :  { %v217_v34 = vpop.permute.xlu1 %216 }
 0x13f   :  { %v222_v55 = vsel %vm220_vm2, %v217_v34, %v219_v14 }
 0x140   :  { %v228_v61 = vadd.f32 %v222_v55, %v177_v53 }
 0x141   :  { %v420_v27 = vpop.permute.xlu0 %419 }
 0x142   :  { %v423_v43 = vsel %vm204_vm3, %v418_v20, %v420_v27  ;;  %v371_v44 = vpop.permute.xlu1 %370  ;;  %v424_v26 = vsel %vm204_vm3, %v420_v27, %v1015_v30 }
 0x143   :  { %v379_v2 = vadd.f32 %v371_v44, %v311_v57 }
 0x145   :  { %v215_v18 = vpop.permute.xlu0 %214 }
 0x146   :  { %v226_v48 = vadd.f32 %v215_v18, %v175_v41  ;;  %v221_v49 = vsel %vm220_vm2, %v215_v18, %v217_v34  ;;  %v541_v42 = vpop.permute.xlu1 %540 }
 0x147   :  { %v227_v51 = vadd.f32 %v221_v49, %v176_v15  ;;  %v544_v52 = vsel %vm204_vm3, %v539_v0, %v541_v42 }
 0x148   :  { %232 = vrot.lane.b32.xlu0 %v226_v48, %s757_s2  ;;  %v549_v29 = vadd.f32 %v544_v52, %v481_v47  ;;  %v124_v52 = vstv %s1083_s1  ;;  %s763_s1 = smov [#allocation8]  }
 0x149   :  { %234 = vrot.lane.b32.xlu1 %v227_v51, %s757_s2  ;;  %v369_v19 = vpop.permute.xlu0 %368  ;;  %s646_s28 = sshll.u32 %s763_s1, 4  ;;  %s647_s28 = int_to_ptr.vmem [resolvable:$true] %s646_s28 }
 0x14a   :  { %v372_v56 = vsel %vm204_vm3, %v993_v63, %v369_v19  ;;  %v373_v11 = vsel %vm204_vm3, %v369_v19, %v371_v44  ;;  %s727_s29 = scalar_lea.vmem %s647_s28, 256  ;;  %p732_p11 = scmp.lt.s32.totalorder %s647_s28, %s647_s28 }
 0x14b   :  { %v377_v60 = vadd.f32 %v372_v56, %v309_v50  ;;  %v378_v14 = vadd.f32 %v373_v11, %v310_v39  ;;  %p728_p10 = scmp.ne.s32.totalorder %s647_s28, %s727_s29  ;;  %p733_p12 = scmp.lt.s32.totalorder %s727_s29, %s727_s29 }
 0x14c   :  { %249 = vrot.lane.b32.xlu0 %v122_v54, %s760_s14 }
 0x14d   :  { %v543_v5 = vpop.permute.xlu0 %542  ;;  %p734_p13 = por %p733_p12, %p732_p11 }
 0x14e   :  { %v545_v28 = vsel %vm204_vm3, %v541_v42, %v543_v5  ;;  %v551_v8 = vadd.f32 %v543_v5, %v483_v22 }
 0x14f   :  { %v550_v35 = vadd.f32 %v545_v28, %v482_v21  ;;  %p735_p0 = pnand %p734_p13, %p728_p10 }
 0x150   :  { %236 = vrot.lane.b32.xlu0 %v228_v61, %s757_s2  ;;  %s43_s2 = sld [smem:[#allocation3]] }
 0x187   :  { %v401_v3 = vpop.permute.xlu1 %400 }
 0x18f   :  { %v405_v7 = vpop.permute.xlu1 %404 }
 0x190   :  { %v413_v4 = vadd.f32 %v405_v7, %v379_v2 }
 0x192   :  { %v430_v63 = vadd.f32 %v1015_v30, %v413_v4  ;;  %v573_v10 = vpop.permute.xlu0 %572 }
 0x193   :  { %v575_v23 = vpop.permute.xlu1 %574 }
 0x194   :  { %610 = vrot.lane.b32.xlu0 %v430_v63, %s761_s24  ;;  %v578_v32 = vsel %vm136_vm0, %v573_v10, %v575_v23 }
 0x195   :  { %v583_v36 = vadd.f32 %v578_v32, %v549_v29 }
 0x196   :  { %v403_v16 = vpop.permute.xlu0 %402 }
 0x197   :  { %v406_v17 = vsel %vm136_vm0, %v401_v3, %v403_v16  ;;  %v407_v20 = vsel %vm136_vm0, %v403_v16, %v405_v7  ;;  %v594_v37 = vpop.permute.xlu1 %593 }
 0x198   :  { %v411_v9 = vadd.f32 %v406_v17, %v377_v60  ;;  %v412_v24 = vadd.f32 %v407_v20, %v378_v14 }
 0x19a   :  { %v577_v0 = vpop.permute.xlu0 %576  ;;  %v429_v33 = vadd.f32 %v424_v26, %v412_v24  ;;  %v428_v12 = vadd.f32 %v423_v43, %v411_v9 }
 0x19b   :  { %v579_v34 = vsel %vm136_vm0, %v575_v23, %v577_v0  ;;  %v585_v27 = vadd.f32 %v577_v0, %v551_v8  ;;  %v133_v45 = vpop.permute.xlu1 %132 }
 0x19c   :  { %608 = vrot.lane.b32.xlu1 %v429_v33, %s761_s24  ;;  %606 = vrot.lane.b32.xlu0 %v428_v12, %s761_s24  ;;  %v584_v38 = vadd.f32 %v579_v34, %v550_v35 }
 0x19d   :  { %v602_v44 = vadd.f32 %v594_v37, %v585_v27 }
 0x19e   :  { %v592_v40 = vpop.permute.xlu0 %591 }
 0x19f   :  { %v595_v30 = vsel %vm204_vm3, %v1023_v31, %v592_v40  ;;  %v596_v1 = vsel %vm204_vm3, %v592_v40, %v594_v37  ;;  %v199_v47 = vpop.permute.xlu1 %198  ;;  %v89_v31 = vstv %s43_s2 }
 0x1a0   :  { %v600_v41 = vadd.f32 %v595_v30, %v583_v36  ;;  %v601_v43 = vadd.f32 %v596_v1, %v584_v38  ;;  %v90_v50 = vmul.f32 %v89_v31, %v870_v6  ;;  %v91_v29 = vmul.f32 %v89_v31, %v893_v25 }
 0x1a2   :  { %622 = vrot.lane.b32.xlu1 %v600_v41, %s762_s25  ;;  %624 = vrot.lane.b32.xlu0 %v601_v43, %s762_s25  ;;  %v131_v15 = vpop.permute.xlu0 %130  ;;  %v125_v54 = vadd.f32 %v124_v52, %v90_v50  ;;  %v126_v60 = vadd.f32 %v124_v52, %v91_v29 }
 0x1a3   :  { %v203_v48 = vpop.permute.xlu1 %202  ;;  %v137_v55 = vsel %vm136_vm0, %v131_v15, %v133_v45 }
 0x1a4   :  { %v141_v56 = vadd.f32 %v137_v55, %v125_v54 }
 0x1a6   :  { %626 = vrot.lane.b32.xlu1 %v602_v44, %s762_s25  ;;  %v135_v46 = vpop.permute.xlu0 %134 }
 0x1a7   :  { %v248_v42 = vpop.permute.xlu1 %247  ;;  %v138_v62 = vsel %vm136_vm0, %v133_v45, %v135_v46 }
 0x1a8   :  { %v142_v58 = vadd.f32 %v138_v62, %v126_v60 }
 0x1aa   :  { %v201_v18 = vpop.permute.xlu0 %200 }
 0x1ab   :  { %v252_v53 = vpop.permute.xlu1 %251  ;;  %v205_v57 = vsel %vm204_vm3, %v199_v47, %v201_v18  ;;  %v206_v5 = vsel %vm204_vm3, %v201_v18, %v203_v48 }
 0x1ac   :  { %v209_v2 = vadd.f32 %v205_v57, %v141_v56  ;;  %v210_v10 = vadd.f32 %v206_v5, %v142_v58 }
 0x1ba   :  { %v233_v49 = vpop.permute.xlu0 %232 }
 0x1bb   :  { %v235_v61 = vpop.permute.xlu1 %234 }
 0x1bc   :  { %v238_v3 = vsel %vm136_vm0, %v233_v49, %v235_v61 }
 0x1bd   :  { %v242_v7 = vadd.f32 %v238_v3, %v209_v2 }
 0x1be   :  { %v250_v51 = vpop.permute.xlu0 %249 }
 0x1bf   :  { %v253_v39 = vsel %vm204_vm3, %v248_v42, %v250_v51  ;;  %v254_v14 = vsel %vm204_vm3, %v250_v51, %v252_v53 }
 0x1c0   :  { %v257_v13 = vadd.f32 %v253_v39, %v242_v7 }
 0x1c2   :  { %v237_v19 = vpop.permute.xlu0 %236 }
 0x1c3   :  { %v239_v63 = vsel %vm136_vm0, %v235_v61, %v237_v19 }
 0x1c4   :  { %v243_v59 = vadd.f32 %v239_v63, %v210_v10 }
 0x1c6   :  { %v258_v9 = vadd.f32 %v254_v14, %v243_v59 }
 0x206   :  { %v611_v6 = vpop.permute.xlu0 %610 }
 0x20e   :  { %v609_v25 = vpop.permute.xlu1 %608  ;;  %v607_v4 = vpop.permute.xlu0 %606 }
 0x20f   :  { %v613_v11 = vsel %vm612_vm4, %v607_v4, %v609_v25  ;;  %v614_v21 = vsel %vm612_vm4, %v609_v25, %v611_v6 }
 0x210   :  { %v617_v16 = vadd.f32 %v613_v11, %v257_v13  ;;  %v618_v26 = vadd.f32 %v614_v21, %v258_v9 }
 0x214   :  { %v623_v17 = vpop.permute.xlu1 %622  ;;  %v625_v20 = vpop.permute.xlu0 %624 }
 0x215   :  { %v629_v23 = vsel %vm628_vm5, %v623_v17, %v625_v20 }
 0x216   :  { %v633_v24 = vadd.f32 %v629_v23, %v617_v16 }
 0x218   :  { %v627_v28 = vpop.permute.xlu1 %626  ;;  %638 = vst [vmem:[#allocation8] sm:$0xff] %v633_v24 }
 0x219   :  { %v630_v22 = vsel %vm628_vm5, %v625_v20, %v627_v28 }
 0x21a   :  { %v634_v0 = vadd.f32 %v630_v22, %v618_v26 }
 0x21c   :  { %639 = vst [vmem:[#allocation8 + $0x8] sm:$0xff] %v634_v0 }
 0x21d   :  { %738 = shalt.err (!%p735_p0)
}
 0x21e   :  { %649 = dma.vmem_to_hbm [thread:$0]  %s647_s28, 256, %s1085_s3, [#allocation5]  }
 0x21f   :  { %751 = dma.done.wait [#allocation5], 256  }
 0x220   :  { %752 = vsyncadd [#allocation5], 4294967040 }
 0x221   :  { %653 = vsyncpa [#allocation4], 1 }
 0x222   :  { %654 = vsyncpa [#allocation5], 1 }
 0x223   :  { %655 = vsyncpa [#allocation6], 1 }

</bundles_post_ra>
